<compile_context>
chip_gen: v7x
topology: tpu7x:2x2x1
jax: 0.10.0
libtpu: 0.0.40
codegen_flags: <defaults>
</compile_context>

<pallas_src>
import numpy as np
import jax
import jax.numpy as jnp
from jax.experimental import pallas as pl
from jax.experimental.pallas import tpu as pltpu

# ---------------- sizes (small, lane-friendly) ----------------
NQ = 128            # number of object queries
T = 128             # max_text_len (sequence length)
H = 32              # hidden dim
N_FUSED = 256       # T text columns + 4 box columns, zero-padded to lane multiple
IMG_C, IMG_HW = 3, 16
NEG_INF = -1e30     # additive bias for padded tokens (logit space)


# ---------------- Pallas kernel: fused detection head ----------------
def head_kernel(thr_logit_ref,                # SMEM (1,) f32: logit-space text threshold
                q_ref, w_ref, bias_ref,       # VMEM: [NQ,H] bf16, [H,N_FUSED] bf16, [1,T] f32
                packed_ref, textmask_ref):    # VMEM: [NQ,128] f32, [NQ,T] int8
    # One fused MXU pass: columns [0:T) are text logits, [T:T+4) are box logits,
    # the rest is zero padding (never read).
    fused = jnp.dot(q_ref[...], w_ref[...], preferred_element_type=jnp.float32)  # [NQ, N_FUSED]

    # Logit-space pad masking: bias row is 0 for valid tokens, -1e30 for padding,
    # so padded tokens can never win the max nor exceed the (finite) threshold.
    logits = fused[:, :T] + bias_ref[...]                   # [NQ, T]  (single VPU add)

    mx_logit = jnp.max(logits, axis=1, keepdims=True)       # [NQ, 1] per-query max logit
    mx = jax.nn.sigmoid(mx_logit)                           # sigmoid on NQ values only
    boxes = jax.nn.sigmoid(fused[:, T:T + 4])               # sigmoid on 4*NQ values only

    # Lane-dense packed output slab: cols 0:4 = box (cxcywh), col 4 = max score,
    # remaining lanes zero.  Direct slice stores -- no concatenate / lane rotation.
    packed_ref[...] = jnp.zeros_like(packed_ref)
    packed_ref[:, 0:4] = boxes
    packed_ref[:, 4:5] = mx

    # Per-token text mask in logit space (sigmoid is monotone, so this matches
    # `sigmoid(logit) > text_threshold` exactly; pads sit at -1e30 and never pass).
    textmask_ref[...] = (logits > thr_logit_ref[0]).astype(jnp.int8)


def run_head(thr_logit, q_bf16, w_fused_bf16, pad_bias):
    vmem = pl.BlockSpec(memory_space=pltpu.MemorySpace.VMEM)
    smem = pl.BlockSpec(memory_space=pltpu.MemorySpace.SMEM)
    return pl.pallas_call(
        head_kernel,
        out_shape=(
            jax.ShapeDtypeStruct((NQ, 128), jnp.float32),  # packed: [:,0:4]=boxes, [:,4]=max
            jax.ShapeDtypeStruct((NQ, T), jnp.int8),       # per-token text mask
        ),
        in_specs=[smem, vmem, vmem, vmem],
        out_specs=(vmem, vmem),
    )(thr_logit, q_bf16, w_fused_bf16, pad_bias)


# ---------------- synthetic "model" parameters (deterministic) -------------
def make_params(key):
    k = jax.random.split(key, 5)
    params = dict(
        query_embed=jax.random.normal(k[0], (NQ, H), jnp.float32) * 0.5,
        tok_embed=jax.random.normal(k[1], (1024, H), jnp.float32) * 0.5,
        pos_embed=jax.random.normal(k[2], (T, H), jnp.float32) * 0.1,
        type_embed=jax.random.normal(k[3], (2, H), jnp.float32) * 0.1,
        img_proj=jax.random.normal(k[4], (IMG_C, H), jnp.float32) * 0.1,
        w_box=jax.random.normal(jax.random.PRNGKey(42), (H, 4), jnp.float32) * 0.5,
    )
    return params


# ---------------- single compiled device path (glue + Pallas call) ---------
@jax.jit
def _device_forward(params, image, input_ids, attention_mask,
                    token_type_ids, position_ids, text_threshold):
    # image: NCHW -> global average pool -> project into query space
    img_feat = jnp.mean(image, axis=(2, 3))                       # [1, C]
    q = params["query_embed"] + img_feat @ params["img_proj"]     # [NQ, H]

    # text features from token, position and type embeddings
    t = (params["tok_embed"][input_ids[0]]
         + params["pos_embed"][position_ids[0]]
         + params["type_embed"][token_type_ids[0]])               # [T, H]

    # fused weight built directly in bf16:
    # [H, T] (pre-transposed text feats) ++ [H, 4] box head, padded to [H, 256]
    w_fused = jnp.concatenate(
        [t.T.astype(jnp.bfloat16), params["w_box"].astype(jnp.bfloat16)], axis=1)
    w_fused = jnp.pad(w_fused, ((0, 0), (0, N_FUSED - (T + 4))))  # [H, N_FUSED] bf16

    # additive pad bias row: 0 for valid tokens, -1e30 for padding
    pad_bias = jnp.where(attention_mask > 0, 0.0, NEG_INF).astype(jnp.float32)  # [1, T]

    # logit-space text threshold (thr in (0,1) => finite)
    thr = jnp.asarray(text_threshold, jnp.float32)
    thr_logit = jnp.reshape(jnp.log(thr) - jnp.log1p(-thr), (1,))

    return run_head(thr_logit, q.astype(jnp.bfloat16), w_fused, pad_bias)


def forward(params, image, input_ids, attention_mask, token_type_ids,
            position_ids, text_self_attention_masks,
            box_threshold, text_threshold):
    # TODO(synk): text_self_attention_masks would drive the text encoder's
    # self-attention; no text transformer in this synthetic head, so unused.
    packed, textmask = _device_forward(
        params, image, input_ids, attention_mask,
        token_type_ids, position_ids, text_threshold)

    # single D2H fetch for everything the host needs
    packed_np, textmask_np = jax.device_get((packed, textmask))

    boxes_np = packed_np[:, 0:4]                       # [NQ, 4]   (lanes 0..3)
    maxs_np = packed_np[:, 4]                          # [NQ]      (lane 4)
    mask_np = maxs_np > float(box_threshold)           # box threshold on host (scalar compare)
    textmask_np = textmask_np.astype(bool)             # [NQ, T]

    # data-dependent compaction (dynamic shape) in host numpy
    pred_scores = maxs_np[mask_np][None, :]            # [1, nsel]
    pred_boxes = boxes_np[mask_np][None, :, :]         # [1, nsel, 4]
    pred_ids_mask = textmask_np[mask_np][None, :, :]   # [1, nsel, T]
    return pred_scores, pred_boxes, pred_ids_mask


if __name__ == "__main__":
    key = jax.random.PRNGKey(0)
    kp, ki, kt = jax.random.split(key, 3)
    params = make_params(kp)

    image = jax.random.normal(ki, (1, IMG_C, IMG_HW, IMG_HW), jnp.float32)  # NCHW
    input_ids = jax.random.randint(kt, (1, T), 0, 1024, jnp.int32)
    attention_mask = jnp.concatenate(
        [jnp.ones((1, T // 2), jnp.int32), jnp.zeros((1, T - T // 2), jnp.int32)], axis=1)
    token_type_ids = jnp.zeros((1, T), jnp.int32)
    position_ids = jnp.arange(T, dtype=jnp.int32)[None, :]
    text_self_attention_masks = jnp.ones((1, T, T), jnp.int32)

    # ensure the device path is fully materialized before host post-processing
    dev_out = _device_forward(params, image, input_ids, attention_mask,
                              token_type_ids, position_ids, 0.25)
    jax.block_until_ready(dev_out)

    scores, boxes, ids_mask = forward(
        params, image, input_ids, attention_mask, token_type_ids,
        position_ids, text_self_attention_masks,
        box_threshold=0.35, text_threshold=0.25)

    assert scores.shape[0] == 1 and boxes.shape[-1] == 4
    assert ids_mask.shape[-1] == T
    print("KERNEL_OK")
</pallas_src>

<mosaic_0001>
module attributes {stable_mosaic.version = 11 : i64} {
  func.func @head_kernel(%arg0: memref<1xf32, #tpu.memory_space<smem>>, %arg1: memref<128x32xbf16, #tpu.memory_space<vmem>>, %arg2: memref<32x256xbf16, #tpu.memory_space<vmem>>, %arg3: memref<1x128xf32, #tpu.memory_space<vmem>>, %arg4: memref<128x128xf32, #tpu.memory_space<vmem>>, %arg5: memref<128x128xi8, #tpu.memory_space<vmem>>) attributes {dimension_semantics = [], scalar_prefetch = 0 : i64, scratch_operands = 0 : i64, tpu.core_type = #tpu.core_type<tc>} {
    %c0 = arith.constant 0 : index
    %c0_0 = arith.constant 0 : index
    %0 = vector.load %arg1[%c0, %c0_0] : memref<128x32xbf16, #tpu.memory_space<vmem>>, vector<128x32xbf16>
    %c0_1 = arith.constant 0 : index
    %c0_2 = arith.constant 0 : index
    %1 = vector.load %arg2[%c0_1, %c0_2] : memref<32x256xbf16, #tpu.memory_space<vmem>>, vector<32x256xbf16>
    %cst = arith.constant dense<0.000000e+00> : vector<128x256xf32>
    %2 = tpu.matmul %0, %1, %cst {dimension_numbers = #tpu.dot_dimension_numbers<[1], [0], [0], [1], [0, 0, 1, 1], [], []>} : vector<128x32xbf16>, vector<32x256xbf16>, vector<128x256xf32> -> vector<128x256xf32>
    %3 = vector.extract_strided_slice %2 {offsets = [0, 0], sizes = [128, 128], strides = [1, 1]} : vector<128x256xf32> to vector<128x128xf32>
    %c0_3 = arith.constant 0 : index
    %c0_4 = arith.constant 0 : index
    %4 = vector.load %arg3[%c0_3, %c0_4] : memref<1x128xf32, #tpu.memory_space<vmem>>, vector<1x128xf32>
    %5 = vector.broadcast %4 : vector<1x128xf32> to vector<128x128xf32>
    %6 = arith.addf %3, %5 : vector<128x128xf32>
    %cst_5 = arith.constant dense<0xFF800000> : vector<128xf32>
    %7 = vector.multi_reduction <maximumf>, %6, %cst_5 [1] : vector<128x128xf32> to vector<128xf32>
    %8 = vector.shape_cast %7 : vector<128xf32> to vector<128x1xf32>
    %9 = arith.negf %8 : vector<128x1xf32>
    %10 = math.exp %9 : vector<128x1xf32>
    %cst_6 = arith.constant 1.000000e+00 : f32
    %11 = vector.broadcast %cst_6 : f32 to vector<128x1xf32>
    %12 = arith.addf %11, %10 : vector<128x1xf32>
    %13 = arith.divf %11, %12 : vector<128x1xf32>
    %14 = vector.extract_strided_slice %2 {offsets = [0, 128], sizes = [128, 4], strides = [1, 1]} : vector<128x256xf32> to vector<128x4xf32>
    %15 = arith.negf %14 : vector<128x4xf32>
    %16 = math.exp %15 : vector<128x4xf32>
    %cst_7 = arith.constant 1.000000e+00 : f32
    %17 = vector.broadcast %cst_7 : f32 to vector<128x4xf32>
    %18 = arith.addf %17, %16 : vector<128x4xf32>
    %19 = arith.divf %17, %18 : vector<128x4xf32>
    %cst_8 = arith.constant 0.000000e+00 : f32
    %20 = vector.broadcast %cst_8 : f32 to vector<128x128xf32>
    %c0_9 = arith.constant 0 : index
    %c0_10 = arith.constant 0 : index
    %21 = vector.load %arg4[%c0_9, %c0_10] : memref<128x128xf32, #tpu.memory_space<vmem>>, vector<128x128xf32>
    tpu.vector_store %arg4[%c0_9, %c0_10], %20 {strides = array<i32>} : memref<128x128xf32, #tpu.memory_space<vmem>>, vector<128x128xf32>,
    %c0_11 = arith.constant 0 : index
    %c0_12 = arith.constant 0 : index
    %22 = vector.load %arg4[%c0_11, %c0_12] : memref<128x128xf32, #tpu.memory_space<vmem>>, vector<128x4xf32>
    tpu.vector_store %arg4[%c0_11, %c0_12], %19 {strides = array<i32>} : memref<128x128xf32, #tpu.memory_space<vmem>>, vector<128x4xf32>,
    %c0_13 = arith.constant 0 : index
    %c4 = arith.constant 4 : index
    %23 = vector.load %arg4[%c0_13, %c4] : memref<128x128xf32, #tpu.memory_space<vmem>>, vector<128x1xf32>
    tpu.vector_store %arg4[%c0_13, %c4], %13 {strides = array<i32>} : memref<128x128xf32, #tpu.memory_space<vmem>>, vector<128x1xf32>,
    %c0_14 = arith.constant 0 : index
    %24 = memref.load %arg0[%c0_14] : memref<1xf32, #tpu.memory_space<smem>>
    %25 = vector.broadcast %24 : f32 to vector<128x128xf32>
    %26 = arith.cmpf ogt, %6, %25 : vector<128x128xf32>
    %27 = arith.extui %26 : vector<128x128xi1> to vector<128x128xi8>
    %c0_15 = arith.constant 0 : index
    %c0_16 = arith.constant 0 : index
    %28 = vector.load %arg5[%c0_15, %c0_16] : memref<128x128xi8, #tpu.memory_space<vmem>>, vector<128x128xi8>
    tpu.vector_store %arg5[%c0_15, %c0_16], %27 {strides = array<i32>} : memref<128x128xi8, #tpu.memory_space<vmem>>, vector<128x128xi8>,
    return
  }
}

</mosaic_0001>

<bundles_post_ra>
// kernel: _device_forward.1
= control target key start
LH: loop header
LB: loop body
LE: loop exit
PB: predicated region body
PF: predicated region fallthrough
CT: control target
= control target key end

     0   :  { %12 = vsyncpa [#allocation4], 0  ;;  %v863_v2 = vmov 0   ;;  %vm105_vm0 = vcmask 261120   ;;  %s1099_s0 = inlined_call_operand.<no memory space> [shape: f32[1], index: 0, kind: input, shape index: {}]   ;;  %s1100_s1 = inlined_call_operand.vmem [shape: bf16[128,32], index: 1, kind: input, shape index: {}]   ;;  %s1101_s2 = inlined_call_operand.vmem [shape: bf16[32,256], index: 2, kind: input, shape index: {}]   ;;  %s1102_s3 = inlined_call_operand.vmem [shape: f32[1,128], index: 3, kind: input, shape index: {}]   ;;  %s1103_s4 = inlined_call_operand.hbm [shape: f32[128,128], index: 4, kind: output, shape index: {0}]   ;;  %s1104_s5 = inlined_call_operand.hbm [shape: s8[128,128], index: 5, kind: output, shape index: {1}]  }
   0x1   :  { %v673_v0 = vld [vmem:[%s1101_s2 + $0x4] ss:$8 sps:$4 sm:$0xff]   ;;  %v675_v1 = vld [vmem:[%s1101_s2] ss:$8 sps:$4 sm:$0xff]   ;;  %162 = vmatprep.mubr.bf16.mxu0 %v863_v2  ;;  %202 = vmatprep.mubr.bf16.mxu1 %v863_v2  ;;  %v676_v3 = vld [vmem:[%s1101_s2 + $0x14] ss:$8 sps:$4 sm:$0xff]  }
   0x2   :  { %130 = vmatprep.subr.bf16.mxu0 %v673_v0  ;;  %663 = vmatprep.subr.bf16.mxu1 %v673_v0  ;;  %v678_v4 = vld [vmem:[%s1101_s2 + $0x10] ss:$8 sps:$4 sm:$0xff]   ;;  %v679_v5 = vld [vmem:[%s1100_s1] sm:$0xff]  }
   0x3   :  { %131 = vmatpush1.bf16.msra.mxu0 %v675_v1  ;;  %665 = vmatpush1.bf16.msra.mxu1 %v675_v1  ;;  %v680_v6 = vld [vmem:[%s1100_s1 + $0x20] sm:$0xff]  }
   0x4   :  { %132 = vmatprep.subr.bf16.mxu0 %v676_v3  ;;  %664 = vmatprep.subr.bf16.mxu1 %v676_v3 }
   0x7   :  { %133 = vmatpush1.bf16.msra.mxu0 %v678_v4  ;;  %666 = vmatpush1.bf16.msra.mxu1 %v678_v4 }
   0xa   :  { %622 = vmatmul.mubr.msk.bf16.vlgmr.msra.gmra.mrb[0].mxu0 %vm105_vm0, %v679_v5  ;;  %626 = vmatmul.mubr.msk.bf16.vlgmr.msra.gmra.mrb[0].mxu1 %vm105_vm0, %v680_v6 }
   0xb   :  { %13 = vsyncpa [#allocation6], 0  ;;  %172 = vmatprep.mubr.bf16.mxu0 %v863_v2  ;;  %212 = vmatprep.mubr.bf16.mxu1 %v863_v2  ;;  %v681_v7 = vld [vmem:[%s1100_s1 + $0x8] sm:$0xff]   ;;  %v683_v9 = vld [vmem:[%s1100_s1 + $0x10] sm:$0xff]   ;;  %v864_v13 = vmov 0.0   ;;  %v961_v21 = vstv %s1099_s0  ;;  %s865_s0 = smov [#allocation5]  }
   0xc   :  { %v682_v8 = vld [vmem:[%s1100_s1 + $0x28] sm:$0xff]   ;;  %v684_v10 = vld [vmem:[%s1100_s1 + $0x30] sm:$0xff]   ;;  %v685_v11 = vld [vmem:[%s1100_s1 + $0x18] sm:$0xff]   ;;  %490 = vst [vmem:[#allocation3] sm:$0xff] %v864_v13 }
   0xd   :  { %v686_v12 = vld [vmem:[%s1100_s1 + $0x38] sm:$0xff]   ;;  %491 = vst [vmem:[#allocation3 + $0x8] sm:$0xff] %v864_v13  ;;  %492 = vst [vmem:[#allocation3 + $0x10] sm:$0xff] %v864_v13  ;;  %v954_v14 = vld [vmem:[%s1102_s3] ss:$0 sm:$0xff]  ;;  %s595_s3 = sshll.u32 %s865_s0, 4  ;;  %s596_s3 = int_to_ptr.vmem [resolvable:$true] %s595_s3 }
   0xe   :  { %493 = vst [vmem:[#allocation3 + $0x18] sm:$0xff] %v864_v13  ;;  %494 = vst [vmem:[#allocation3 + $0x20] sm:$0xff] %v864_v13  ;;  %s815_s19 = scalar_lea.vmem %s596_s3, 512  ;;  %p820_p1 = scmp.lt.s32.totalorder %s596_s3, %s596_s3 }
   0xf   :  { %495 = vst [vmem:[#allocation3 + $0x28] sm:$0xff] %v864_v13  ;;  %496 = vst [vmem:[#allocation3 + $0x30] sm:$0xff] %v864_v13  ;;  %p816_p0 = scmp.ne.s32.totalorder %s596_s3, %s815_s19  ;;  %p821_p2 = scmp.lt.s32.totalorder %s815_s19, %s815_s19 }
  0x10   :  { %497 = vst [vmem:[#allocation3 + $0x38] sm:$0xff] %v864_v13  ;;  %498 = vst [vmem:[#allocation3 + $0x40] sm:$0xff] %v864_v13 }
  0x11   :  { %499 = vst [vmem:[#allocation3 + $0x48] sm:$0xff] %v864_v13  ;;  %500 = vst [vmem:[#allocation3 + $0x50] sm:$0xff] %v864_v13  ;;  %p822_p3 = por %p821_p2, %p820_p1 }
  0x12   :  { %623 = vmatmul.mubr.msk.bf16.gmra.mrb[4].mxu0 %vm105_vm0, %v681_v7  ;;  %627 = vmatmul.mubr.msk.bf16.gmra.mrb[4].mxu1 %vm105_vm0, %v682_v8  ;;  %501 = vst [vmem:[#allocation3 + $0x58] sm:$0xff] %v864_v13  ;;  %502 = vst [vmem:[#allocation3 + $0x60] sm:$0xff] %v864_v13 }
  0x13   :  { %182 = vmatprep.mubr.bf16.mxu0 %v863_v2  ;;  %222 = vmatprep.mubr.bf16.mxu1 %v863_v2  ;;  %503 = vst [vmem:[#allocation3 + $0x68] sm:$0xff] %v864_v13  ;;  %504 = vst [vmem:[#allocation3 + $0x70] sm:$0xff] %v864_v13  ;;  %p823_p4 = pnand %p822_p3, %p816_p0 }
  0x14   :  { %505 = vst [vmem:[#allocation3 + $0x78] sm:$0xff] %v864_v13 }
  0x1a   :  { %624 = vmatmul.mubr.msk.bf16.gmra.mrb[8].mxu0 %vm105_vm0, %v683_v9  ;;  %628 = vmatmul.mubr.msk.bf16.gmra.mrb[8].mxu1 %vm105_vm0, %v684_v10 }
  0x1b   :  { %192 = vmatprep.mubr.bf16.mxu0 %v863_v2  ;;  %232 = vmatprep.mubr.bf16.mxu1 %v863_v2 }
  0x22   :  { %625 = vmatmul.mubr.msk.bf16.gmra.mrb[12].mxu0 %vm105_vm0, %v685_v11  ;;  %629 = vmatmul.mubr.msk.bf16.gmra.mrb[12].mxu1 %vm105_vm0, %v686_v12 }
  0xdd   :  { %v164_v15 = vpop.f32.mrb[0].mxu0  ;;  %v204_v16 = vpop.f32.mrb[0].mxu1 }
  0xde   :  { %v250_v17 = vadd.f32 %v954_v14, %v164_v15  ;;  %v258_v18 = vadd.f32 %v954_v14, %v204_v16  ;;  %v166_v19 = vpop.f32.mrb[1].mxu0  ;;  %v206_v20 = vpop.f32.mrb[1].mxu1 }
  0xdf   :  { %v647_v22 = vmul.f32 -1.442695, %v166_v19  ;;  %v655_v23 = vmul.f32 -1.442695, %v206_v20  ;;  %v168_v24 = vpop.f32.mrb[2].mxu0  ;;  %v208_v25 = vpop.f32.mrb[2].mxu1 }
  0xe0   :  { %v251_v26 = vadd.f32 %v954_v14, %v168_v24  ;;  %v259_v27 = vadd.f32 %v954_v14, %v208_v25  ;;  %v210_v28 = vpop.f32.mrb[3].mxu1  ;;  %266 = vmax.xlane.f32.xlu0 %v250_v17  ;;  %v170_v29 = vpop.f32.mrb[3].mxu0  ;;  %vm550_vm1 = vcmp.gt.f32.partialorder %v258_v18, %v961_v21  ;;  %vm542_vm2 = vcmp.gt.f32.partialorder %v250_v17, %v961_v21 }
  0xe1   :  { %687 = vpow2.f32 %v647_v22  ;;  %v656_v30 = vmul.f32 -1.442695, %v210_v28  ;;  %v648_v31 = vmul.f32 -1.442695, %v170_v29 }
  0xe2   :  { %689 = vpow2.f32 %v655_v23  ;;  %vm543_vm3 = vcmp.gt.f32.partialorder %v251_v26, %v961_v21  ;;  %vm551_vm4 = vcmp.gt.f32.partialorder %v259_v27, %v961_v21  ;;  %284 = vmax.xlane.f32.xlu1 %v259_v27 }
  0xe3   :  { %vm969_vm5 = vmpackc.low %vm543_vm3, %vm542_vm2  ;;  %691 = vpow2.f32 %v656_v30 }
  0xe4   :  { %vm973_vm6 = vmpackc.low %vm551_vm4, %vm550_vm1  ;;  %693 = vpow2.f32 %v648_v31  ;;  %282 = vmax.xlane.f32.xlu0 %v258_v18 }
  0xe5   :  { %v174_v34 = vpop.f32.mrb[4].mxu0  ;;  %v214_v35 = vpop.f32.mrb[4].mxu1 }
  0xe6   :  { %v252_v36 = vadd.f32 %v954_v14, %v174_v34  ;;  %v260_v37 = vadd.f32 %v954_v14, %v214_v35  ;;  %v176_v38 = vpop.f32.mrb[5].mxu0  ;;  %v216_v39 = vpop.f32.mrb[5].mxu1 }
  0xe7   :  { %v649_v40 = vmul.f32 -1.442695, %v176_v38  ;;  %v657_v41 = vmul.f32 -1.442695, %v216_v39  ;;  %v178_v42 = vpop.f32.mrb[6].mxu0  ;;  %v218_v43 = vpop.f32.mrb[6].mxu1 }
  0xe8   :  { %v253_v44 = vadd.f32 %v954_v14, %v178_v42  ;;  %v261_v45 = vadd.f32 %v954_v14, %v218_v43  ;;  %268 = vmax.xlane.f32.xlu0 %v251_v26  ;;  %v180_v46 = vpop.f32.mrb[7].mxu0  ;;  %v220_v47 = vpop.f32.mrb[7].mxu1  ;;  %vm544_vm7 = vcmp.gt.f32.partialorder %v252_v36, %v961_v21  ;;  %270 = vmax.xlane.f32.xlu1 %v252_v36 }
  0xe9   :  { %695 = vpow2.f32 %v649_v40  ;;  %v650_v48 = vmul.f32 -1.442695, %v180_v46  ;;  %v658_v49 = vmul.f32 -1.442695, %v220_v47  ;;  %vm552_vm8 = vcmp.gt.f32.partialorder %v260_v37, %v961_v21 }
  0xea   :  { %697 = vpow2.f32 %v657_v41  ;;  %vm545_vm9 = vcmp.gt.f32.partialorder %v253_v44, %v961_v21  ;;  %vm553_vm10 = vcmp.gt.f32.partialorder %v261_v45, %v961_v21 }
  0xeb   :  { %v688_v50 = vpop.eup %687  ;;  %vm559_vm11 = vmpackc.low %vm545_vm9, %vm544_vm7  ;;  %699 = vpow2.f32 %v650_v48 }
  0xec   :  { %v690_v51 = vpop.eup %689  ;;  %v442_v52 = vadd.f32 1.0, %v688_v50  ;;  %vm560_vm12 = vmpackc.even %vm559_vm11, %vm969_vm5  ;;  %701 = vpow2.f32 %v658_v49  ;;  %286 = vmax.xlane.f32.xlu0 %v260_v37  ;;  %272 = vmax.xlane.f32.xlu1 %v253_v44  ;;  %vm506_vm5 = vcmask 31744  }
  0xed   :  { %v692_v53 = vpop.eup %691  ;;  %v450_v54 = vadd.f32 1.0, %v690_v51  ;;  %v570_v55 = vsel %vm560_vm12, 16843009, %v863_v2  ;;  %vm990_vm13 = vmpackc.low %vm553_vm10, %vm552_vm8  ;;  %v184_v57 = vpop.f32.mrb[8].mxu0 }
  0xee   :  { %v224_v58 = vpop.f32.mrb[8].mxu1  ;;  %v694_v59 = vpop.eup %693  ;;  %703 = vrcp.f32 %v442_v52  ;;  %v451_v60 = vadd.f32 1.0, %v692_v53  ;;  %574 = vst [vmem:[#allocation5] sm:$0xff] %v570_v55  ;;  %vm566_vm14 = vmpackc.even %vm990_vm13, %vm973_vm6  ;;  %v254_v61 = vadd.f32 %v954_v14, %v184_v57 }
  0xef   :  { %v186_v62 = vpop.f32.mrb[9].mxu0  ;;  %v262_v63 = vadd.f32 %v954_v14, %v224_v58  ;;  %v226_v0 = vpop.f32.mrb[9].mxu1  ;;  %705 = vrcp.f32 %v450_v54  ;;  %v443_v1 = vadd.f32 1.0, %v694_v59  ;;  %v572_v3 = vsel %vm566_vm14, 16843009, %v863_v2 }
  0xf0   :  { %v651_v4 = vmul.f32 -1.442695, %v186_v62  ;;  %v188_v5 = vpop.f32.mrb[10].mxu0  ;;  %707 = vrcp.f32 %v451_v60  ;;  %576 = vst [vmem:[#allocation5 + $0x10] sm:$0xff] %v572_v3  ;;  %vm546_vm15 = vcmp.gt.f32.partialorder %v254_v61, %v961_v21  ;;  %v228_v8 = vpop.f32.mrb[10].mxu1  ;;  %274 = vmax.xlane.f32.xlu0 %v254_v61  ;;  %288 = vmax.xlane.f32.xlu1 %v261_v45 }
  0xf1   :  { %v255_v6 = vadd.f32 %v954_v14, %v188_v5  ;;  %vm554_vm0 = vcmp.gt.f32.partialorder %v262_v63, %v961_v21  ;;  %v190_v7 = vpop.f32.mrb[11].mxu0  ;;  %709 = vrcp.f32 %v443_v1  ;;  %v659_v10 = vmul.f32 -1.442695, %v226_v0  ;;  %v230_v12 = vpop.f32.mrb[11].mxu1 }
  0xf2   :  { %v652_v9 = vmul.f32 -1.442695, %v190_v7  ;;  %v263_v11 = vadd.f32 %v954_v14, %v228_v8  ;;  %711 = vpow2.f32 %v651_v4  ;;  %v660_v13 = vmul.f32 -1.442695, %v230_v12 }
  0xf3   :  { %vm547_vm1 = vcmp.gt.f32.partialorder %v255_v6, %v961_v21  ;;  %v696_v15 = vpop.eup %695 }
  0xf4   :  { %vm1008_vm2 = vmpackc.low %vm547_vm1, %vm546_vm15  ;;  %713 = vpow2.f32 %v652_v9  ;;  %vm555_vm3 = vcmp.gt.f32.partialorder %v263_v11, %v961_v21  ;;  %v698_v17 = vpop.eup %697  ;;  %v444_v18 = vadd.f32 1.0, %v696_v15  ;;  %290 = vmax.xlane.f32.xlu0 %v262_v63  ;;  %276 = vmax.xlane.f32.xlu1 %v255_v6 }
  0xf5   :  { %715 = vpow2.f32 %v659_v10  ;;  %vm1015_vm4 = vmpackc.low %vm555_vm3, %vm554_vm0  ;;  %v700_v20 = vpop.eup %699  ;;  %v452_v22 = vadd.f32 1.0, %v698_v17  ;;  %v194_v23 = vpop.f32.mrb[12].mxu0 }
  0xf6   :  { %717 = vpow2.f32 %v660_v13  ;;  %v234_v24 = vpop.f32.mrb[12].mxu1  ;;  %v702_v25 = vpop.eup %701  ;;  %v445_v26 = vadd.f32 1.0, %v700_v20  ;;  %v256_v27 = vadd.f32 %v954_v14, %v194_v23 }
  0xf7   :  { %719 = vrcp.f32 %v444_v18  ;;  %v264_v28 = vadd.f32 %v954_v14, %v234_v24  ;;  %v236_v29 = vpop.f32.mrb[13].mxu1  ;;  %v196_v30 = vpop.f32.mrb[13].mxu0  ;;  %v453_v31 = vadd.f32 1.0, %v702_v25 }
  0xf8   :  { %721 = vrcp.f32 %v452_v22  ;;  %v661_v32 = vmul.f32 -1.442695, %v236_v29  ;;  %v653_v33 = vmul.f32 -1.442695, %v196_v30  ;;  %v198_v34 = vpop.f32.mrb[14].mxu0  ;;  %v704_v35 = vpop.eup %703  ;;  %vm548_vm6 = vcmp.gt.f32.partialorder %v256_v27, %v961_v21  ;;  %278 = vmax.xlane.f32.xlu0 %v256_v27  ;;  %292 = vmax.xlane.f32.xlu1 %v263_v11 }
  0xf9   :  { %723 = vrcp.f32 %v445_v26  ;;  %v257_v36 = vadd.f32 %v954_v14, %v198_v34  ;;  %v238_v37 = vpop.f32.mrb[14].mxu1  ;;  %v200_v38 = vpop.f32.mrb[15].mxu0  ;;  %507 = vst.msk [vmem:[#allocation3] sm:$0xff] %vm506_vm5, %v704_v35  ;;  %vm556_vm7 = vcmp.gt.f32.partialorder %v264_v28, %v961_v21 }
  0xfa   :  { %v706_v39 = vpop.eup %705  ;;  %725 = vrcp.f32 %v453_v31  ;;  %v265_v40 = vadd.f32 %v954_v14, %v238_v37  ;;  %v654_v41 = vmul.f32 -1.442695, %v200_v38  ;;  %v240_v42 = vpop.f32.mrb[15].mxu1 }
  0xfb   :  { %v708_v43 = vpop.eup %707  ;;  %515 = vst.msk [vmem:[#allocation3 + $0x40] sm:$0xff] %vm506_vm5, %v706_v39  ;;  %727 = vpow2.f32 %v661_v32  ;;  %vm549_vm8 = vcmp.gt.f32.partialorder %v257_v36, %v961_v21  ;;  %v662_v44 = vmul.f32 -1.442695, %v240_v42 }
  0xfc   :  { %v710_v45 = vpop.eup %709  ;;  %516 = vst.msk [vmem:[#allocation3 + $0x48] sm:$0xff] %vm506_vm5, %v708_v43  ;;  %729 = vpow2.f32 %v653_v33  ;;  %vm562_vm9 = vmpackc.low %vm549_vm8, %vm548_vm6  ;;  %vm557_vm10 = vcmp.gt.f32.partialorder %v265_v40, %v961_v21  ;;  %294 = vmax.xlane.f32.xlu0 %v264_v28  ;;  %280 = vmax.xlane.f32.xlu1 %v257_v36 }
  0xfd   :  { %v712_v14 = vpop.eup %711  ;;  %508 = vst.msk [vmem:[#allocation3 + $0x8] sm:$0xff] %vm506_vm5, %v710_v45  ;;  %vm563_vm11 = vmpackc.even %vm562_vm9, %vm1008_vm2  ;;  %731 = vpow2.f32 %v654_v41 }
  0xfe   :  { %v714_v46 = vpop.eup %713  ;;  %v446_v47 = vadd.f32 1.0, %v712_v14  ;;  %v571_v48 = vsel %vm563_vm11, 16843009, %v863_v2  ;;  %vm568_vm12 = vmpackc.low %vm557_vm10, %vm556_vm7  ;;  %733 = vpow2.f32 %v662_v44 }
  0xff   :  { %v716_v49 = vpop.eup %715  ;;  %v447_v50 = vadd.f32 1.0, %v714_v46  ;;  %575 = vst [vmem:[#allocation5 + $0x8] sm:$0xff] %v571_v48  ;;  %vm569_vm13 = vmpackc.even %vm568_vm12, %vm1015_vm4 }
 0x100   :  { %v718_v51 = vpop.eup %717  ;;  %735 = vrcp.f32 %v446_v47  ;;  %v454_v52 = vadd.f32 1.0, %v716_v49  ;;  %v573_v53 = vsel %vm569_vm13, 16843009, %v863_v2  ;;  %296 = vmax.xlane.f32.xlu1 %v265_v40 }
 0x101   :  { %v720_v54 = vpop.eup %719  ;;  %737 = vrcp.f32 %v447_v50  ;;  %v455_v55 = vadd.f32 1.0, %v718_v51  ;;  %577 = vst [vmem:[#allocation5 + $0x18] sm:$0xff] %v573_v53 }
 0x102   :  { %v722_v56 = vpop.eup %721  ;;  %509 = vst.msk [vmem:[#allocation3 + $0x10] sm:$0xff] %vm506_vm5, %v720_v54  ;;  %739 = vrcp.f32 %v454_v52 }
 0x103   :  { %v724_v21 = vpop.eup %723  ;;  %517 = vst.msk [vmem:[#allocation3 + $0x50] sm:$0xff] %vm506_vm5, %v722_v56  ;;  %741 = vrcp.f32 %v455_v55 }
 0x104   :  { %v726_v57 = vpop.eup %725  ;;  %510 = vst.msk [vmem:[#allocation3 + $0x18] sm:$0xff] %vm506_vm5, %v724_v21 }
 0x105   :  { %v728_v58 = vpop.eup %727  ;;  %518 = vst.msk [vmem:[#allocation3 + $0x58] sm:$0xff] %vm506_vm5, %v726_v57 }
 0x106   :  { %v730_v2 = vpop.eup %729  ;;  %v456_v59 = vadd.f32 1.0, %v728_v58 }
 0x107   :  { %v732_v60 = vpop.eup %731  ;;  %v448_v61 = vadd.f32 1.0, %v730_v2 }
 0x108   :  { %v734_v62 = vpop.eup %733  ;;  %743 = vrcp.f32 %v456_v59  ;;  %v449_v63 = vadd.f32 1.0, %v732_v60 }
 0x109   :  { %745 = vrcp.f32 %v448_v61  ;;  %v457_v0 = vadd.f32 1.0, %v734_v62 }
 0x10a   :  { %v736_v1 = vpop.eup %735  ;;  %747 = vrcp.f32 %v449_v63 }
 0x10b   :  { %v738_v3 = vpop.eup %737  ;;  %511 = vst.msk [vmem:[#allocation3 + $0x20] sm:$0xff] %vm506_vm5, %v736_v1  ;;  %749 = vrcp.f32 %v457_v0 }
 0x10c   :  { %v740_v4 = vpop.eup %739  ;;  %512 = vst.msk [vmem:[#allocation3 + $0x28] sm:$0xff] %vm506_vm5, %v738_v3 }
 0x10d   :  { %v742_v5 = vpop.eup %741  ;;  %519 = vst.msk [vmem:[#allocation3 + $0x60] sm:$0xff] %vm506_vm5, %v740_v4 }
 0x10e   :  { %520 = vst.msk [vmem:[#allocation3 + $0x68] sm:$0xff] %vm506_vm5, %v742_v5 }
 0x112   :  { %v744_v6 = vpop.eup %743 }
 0x113   :  { %v746_v7 = vpop.eup %745  ;;  %521 = vst.msk [vmem:[#allocation3 + $0x70] sm:$0xff] %vm506_vm5, %v744_v6 }
 0x114   :  { %v748_v8 = vpop.eup %747  ;;  %513 = vst.msk [vmem:[#allocation3 + $0x30] sm:$0xff] %vm506_vm5, %v746_v7 }
 0x115   :  { %v750_v9 = vpop.eup %749  ;;  %514 = vst.msk [vmem:[#allocation3 + $0x38] sm:$0xff] %vm506_vm5, %v748_v8 }
 0x116   :  { %522 = vst.msk [vmem:[#allocation3 + $0x78] sm:$0xff] %vm506_vm5, %v750_v9 }
 0x117   :  { %826 = shalt.err (!%p823_p4)
}
 0x118   :  { %s827_s22 = scalar_lea.hbm %s1104_s5, 512 }
 0x119   :  { %p828_p5 = scmp.ne.s32.totalorder %s1104_s5, %s827_s22  ;;  %p831_p6 = scmp.lt.u32.totalorder %s827_s22, %s1104_s5 }
 0x11b   :  { %p833_p7 = pnand %p831_p6, %p828_p5 }
 0x11d   :  { %836 = shalt.err (!%p833_p7)
}
 0x11e   :  { %s866_s27 = smov 128   ;;  %s867_s28 = smov 8   ;;  %vm523_vm14 = vcmask 39968  }
 0x11f   :  { %601 = dma.vmem_to_hbm [thread:$0]  %s596_s3, 512, %s1104_s5, [#allocation6], %s866_s27, %s866_s27, %s867_s28  }
 0x120   :  { %s868_s5 = smov [#allocation3]  }
 0x121   :  { %s583_s30 = sshll.u32 %s868_s5, 4  ;;  %s584_s30 = int_to_ptr.vmem [resolvable:$true] %s583_s30 }
 0x122   :  { %s837_s6 = scalar_lea.vmem %s584_s30, 2048  ;;  %p842_p9 = scmp.lt.s32.totalorder %s584_s30, %s584_s30 }
 0x123   :  { %p838_p8 = scmp.ne.s32.totalorder %s584_s30, %s837_s6  ;;  %p843_p10 = scmp.lt.s32.totalorder %s837_s6, %s837_s6 }
 0x125   :  { %p844_p11 = por %p843_p10, %p842_p9 }
 0x127   :  { %p845_p12 = pnand %p844_p11, %p838_p8 }
 0x16d   :  { %v267_v10 = vpop.xlane.xlu0 %266 }
 0x16e   :  { %v631_v11 = vmul.f32 -1.442695, %v267_v10 }
 0x16f   :  { %v285_v12 = vpop.xlane.xlu1 %284 }
 0x170   :  { %751 = vpow2.f32 %v631_v11  ;;  %v640_v13 = vmul.f32 -1.442695, %v285_v12 }
 0x171   :  { %v283_v15 = vpop.xlane.xlu0 %282 }
 0x172   :  { %753 = vpow2.f32 %v640_v13  ;;  %v639_v16 = vmul.f32 -1.442695, %v283_v15 }
 0x174   :  { %755 = vpow2.f32 %v639_v16 }
 0x175   :  { %v269_v17 = vpop.xlane.xlu0 %268  ;;  %v271_v19 = vpop.xlane.xlu1 %270 }
 0x176   :  { %v632_v18 = vmul.f32 -1.442695, %v269_v17  ;;  %v633_v20 = vmul.f32 -1.442695, %v271_v19 }
 0x178   :  { %757 = vpow2.f32 %v632_v18 }
 0x179   :  { %759 = vpow2.f32 %v633_v20  ;;  %v287_v22 = vpop.xlane.xlu0 %286  ;;  %v273_v24 = vpop.xlane.xlu1 %272 }
 0x17a   :  { %v752_v23 = vpop.eup %751  ;;  %v641_v25 = vmul.f32 -1.442695, %v287_v22  ;;  %v634_v27 = vmul.f32 -1.442695, %v273_v24 }
 0x17b   :  { %v346_v26 = vadd.f32 1.0, %v752_v23 }
 0x17c   :  { %v754_v28 = vpop.eup %753  ;;  %761 = vpow2.f32 %v641_v25 }
 0x17d   :  { %763 = vrcp.f32 %v346_v26  ;;  %v355_v29 = vadd.f32 1.0, %v754_v28  ;;  %v275_v30 = vpop.xlane.xlu0 %274  ;;  %v289_v32 = vpop.xlane.xlu1 %288 }
 0x17e   :  { %v756_v31 = vpop.eup %755  ;;  %765 = vpow2.f32 %v634_v27  ;;  %v635_v33 = vmul.f32 -1.442695, %v275_v30  ;;  %v642_v35 = vmul.f32 -1.442695, %v289_v32 }
 0x17f   :  { %767 = vrcp.f32 %v355_v29  ;;  %v354_v34 = vadd.f32 1.0, %v756_v31 }
 0x180   :  { %769 = vpow2.f32 %v635_v33 }
 0x181   :  { %771 = vrcp.f32 %v354_v34  ;;  %v291_v36 = vpop.xlane.xlu0 %290  ;;  %v277_v38 = vpop.xlane.xlu1 %276 }
 0x182   :  { %v758_v37 = vpop.eup %757  ;;  %773 = vpow2.f32 %v642_v35  ;;  %v643_v39 = vmul.f32 -1.442695, %v291_v36  ;;  %v636_v42 = vmul.f32 -1.442695, %v277_v38 }
 0x183   :  { %v760_v40 = vpop.eup %759  ;;  %v347_v41 = vadd.f32 1.0, %v758_v37 }
 0x184   :  { %v348_v43 = vadd.f32 1.0, %v760_v40  ;;  %775 = vpow2.f32 %v643_v39 }
 0x185   :  { %777 = vrcp.f32 %v347_v41  ;;  %v279_v44 = vpop.xlane.xlu0 %278  ;;  %v293_v14 = vpop.xlane.xlu1 %292 }
 0x186   :  { %v762_v45 = vpop.eup %761  ;;  %779 = vrcp.f32 %v348_v43  ;;  %v637_v46 = vmul.f32 -1.442695, %v279_v44  ;;  %v644_v49 = vmul.f32 -1.442695, %v293_v14 }
 0x187   :  { %v764_v47 = vpop.eup %763  ;;  %v356_v48 = vadd.f32 1.0, %v762_v45  ;;  %781 = vpow2.f32 %v636_v42 }
 0x188   :  { %v766_v50 = vpop.eup %765  ;;  %524 = vst.msk [vmem:[#allocation3] sm:$0xff] %vm523_vm14, %v764_v47  ;;  %783 = vpow2.f32 %v637_v46 }
 0x189   :  { %v768_v51 = vpop.eup %767  ;;  %v349_v52 = vadd.f32 1.0, %v766_v50  ;;  %785 = vrcp.f32 %v356_v48  ;;  %v295_v53 = vpop.xlane.xlu0 %294 }
 0x18a   :  { %v770_v54 = vpop.eup %769  ;;  %533 = vst.msk [vmem:[#allocation3 + $0x48] sm:$0xff] %vm523_vm14, %v768_v51  ;;  %787 = vpow2.f32 %v644_v49  ;;  %v281_v55 = vpop.xlane.xlu1 %280  ;;  %v645_v56 = vmul.f32 -1.442695, %v295_v53 }
 0x18b   :  { %v772_v21 = vpop.eup %771  ;;  %789 = vrcp.f32 %v349_v52  ;;  %v350_v57 = vadd.f32 1.0, %v770_v54  ;;  %v638_v58 = vmul.f32 -1.442695, %v281_v55 }
 0x18c   :  { %v774_v2 = vpop.eup %773  ;;  %532 = vst.msk [vmem:[#allocation3 + $0x40] sm:$0xff] %vm523_vm14, %v772_v21  ;;  %791 = vpow2.f32 %v645_v56 }
 0x18d   :  { %v357_v59 = vadd.f32 1.0, %v774_v2  ;;  %793 = vrcp.f32 %v350_v57 }
 0x18e   :  { %v776_v60 = vpop.eup %775  ;;  %795 = vpow2.f32 %v638_v58  ;;  %v297_v61 = vpop.xlane.xlu1 %296 }
 0x18f   :  { %v778_v62 = vpop.eup %777  ;;  %797 = vrcp.f32 %v357_v59  ;;  %v358_v63 = vadd.f32 1.0, %v776_v60  ;;  %v646_v0 = vmul.f32 -1.442695, %v297_v61 }
 0x190   :  { %v780_v1 = vpop.eup %779  ;;  %525 = vst.msk [vmem:[#allocation3 + $0x8] sm:$0xff] %vm523_vm14, %v778_v62 }
 0x191   :  { %v782_v3 = vpop.eup %781  ;;  %526 = vst.msk [vmem:[#allocation3 + $0x10] sm:$0xff] %vm523_vm14, %v780_v1  ;;  %799 = vrcp.f32 %v358_v63 }
 0x192   :  { %v784_v4 = vpop.eup %783  ;;  %v351_v5 = vadd.f32 1.0, %v782_v3  ;;  %801 = vpow2.f32 %v646_v0 }
 0x193   :  { %v786_v6 = vpop.eup %785  ;;  %v352_v7 = vadd.f32 1.0, %v784_v4 }
 0x194   :  { %v788_v8 = vpop.eup %787  ;;  %534 = vst.msk [vmem:[#allocation3 + $0x50] sm:$0xff] %vm523_vm14, %v786_v6  ;;  %803 = vrcp.f32 %v351_v5 }
 0x195   :  { %v790_v9 = vpop.eup %789  ;;  %v359_v10 = vadd.f32 1.0, %v788_v8  ;;  %805 = vrcp.f32 %v352_v7 }
 0x196   :  { %v792_v11 = vpop.eup %791  ;;  %527 = vst.msk [vmem:[#allocation3 + $0x18] sm:$0xff] %vm523_vm14, %v790_v9 }
 0x197   :  { %v794_v12 = vpop.eup %793  ;;  %807 = vrcp.f32 %v359_v10  ;;  %v360_v13 = vadd.f32 1.0, %v792_v11 }
 0x198   :  { %v796_v15 = vpop.eup %795  ;;  %528 = vst.msk [vmem:[#allocation3 + $0x20] sm:$0xff] %vm523_vm14, %v794_v12 }
 0x199   :  { %v798_v16 = vpop.eup %797  ;;  %v353_v17 = vadd.f32 1.0, %v796_v15  ;;  %809 = vrcp.f32 %v360_v13 }
 0x19a   :  { %535 = vst.msk [vmem:[#allocation3 + $0x58] sm:$0xff] %vm523_vm14, %v798_v16 }
 0x19b   :  { %v800_v18 = vpop.eup %799  ;;  %811 = vrcp.f32 %v353_v17 }
 0x19c   :  { %v802_v19 = vpop.eup %801  ;;  %536 = vst.msk [vmem:[#allocation3 + $0x60] sm:$0xff] %vm523_vm14, %v800_v18 }
 0x19d   :  { %v361_v20 = vadd.f32 1.0, %v802_v19 }
 0x19e   :  { %v804_v22 = vpop.eup %803 }
 0x19f   :  { %v806_v23 = vpop.eup %805  ;;  %529 = vst.msk [vmem:[#allocation3 + $0x28] sm:$0xff] %vm523_vm14, %v804_v22  ;;  %813 = vrcp.f32 %v361_v20 }
 0x1a0   :  { %530 = vst.msk [vmem:[#allocation3 + $0x30] sm:$0xff] %vm523_vm14, %v806_v23 }
 0x1a1   :  { %v808_v24 = vpop.eup %807 }
 0x1a2   :  { %537 = vst.msk [vmem:[#allocation3 + $0x68] sm:$0xff] %vm523_vm14, %v808_v24 }
 0x1a3   :  { %v810_v25 = vpop.eup %809 }
 0x1a4   :  { %538 = vst.msk [vmem:[#allocation3 + $0x70] sm:$0xff] %vm523_vm14, %v810_v25 }
 0x1a5   :  { %v812_v26 = vpop.eup %811 }
 0x1a6   :  { %531 = vst.msk [vmem:[#allocation3 + $0x38] sm:$0xff] %vm523_vm14, %v812_v26 }
 0x1a9   :  { %v814_v27 = vpop.eup %813 }
 0x1aa   :  { %539 = vst.msk [vmem:[#allocation3 + $0x78] sm:$0xff] %vm523_vm14, %v814_v27 }
 0x1ab   :  { %848 = shalt.err (!%p845_p12)
}
 0x1ac   :  { %s849_s9 = scalar_lea.hbm %s1103_s4, 2048 }
 0x1ad   :  { %p850_p13 = scmp.ne.s32.totalorder %s1103_s4, %s849_s9  ;;  %p853_p0 = scmp.lt.u32.totalorder %s849_s9, %s1103_s4 }
 0x1af   :  { %p855_p1 = pnand %p853_p0, %p850_p13 }
 0x1b1   :  { %858 = shalt.err (!%p855_p1)
}
 0x1b2   :  { %589 = dma.vmem_to_hbm [thread:$0]  %s584_s30, 2048, %s1103_s4, [#allocation4], %s866_s27, %s866_s27, %s867_s28  }
 0x1b3   :  { %859 = dma.done.wait [#allocation4], 2048  }
 0x1b4   :  { %860 = vsyncadd [#allocation4], 4294965248 }
 0x1b5   :  { %861 = dma.done.wait [#allocation6], 512  }
 0x1b6   :  { %862 = vsyncadd [#allocation6], 4294966784 }
 0x1b7   :  { %608 = vsyncpa [#allocation4], 1 }
 0x1b8   :  { %609 = vsyncpa [#allocation6], 1 }

</bundles_post_ra>
